<compile_context>
chip_gen: v5e
topology: v5e:2x2
jax: 0.10.0
libtpu: 0.0.40
codegen_flags: <defaults>
</compile_context>

<pallas_src>
import functools

import jax
import jax.numpy as jnp
from jax.experimental import pallas as pl
from jax.experimental.pallas import tpu as pltpu


# --------------------------------------------------------------------------
# Kernel 1: one-shot mask computation (seed -> dilate -> renormalize).
# --------------------------------------------------------------------------
def _mask_kernel(gamma_ref, u_ref, dil_ref, mask_ref):
    """gamma: SMEM (1,) f32; u: (B, HW) f32; dil: (HW, HW) f32; mask out: (B, HW) f32."""
    gamma = gamma_ref[0]

    # 1) Bernoulli seed mask: 1.0 where a block centre is dropped.
    seed = (u_ref[...] < gamma).astype(jnp.float32)                   # (B, HW)

    # 2) Block dilation: max-pool of a 0/1 mask == window-sum > 0 (one MXU matmul).
    pooled = jnp.dot(seed, dil_ref[...], preferred_element_type=jnp.float32)
    block_mask = jnp.where(pooled > 0.0, 0.0, 1.0)                    # 1.0 = keep

    # 3) Renormalization folded into the mask (f32).  keep == 0 -> scale 0,
    #    an intentional (benign) deviation from the reference library's 1/0.
    keep = jnp.sum(block_mask)
    total = jnp.float32(block_mask.size)
    scale = jnp.where(keep > 0.0, total / keep, 0.0)
    mask_ref[...] = block_mask * scale


@jax.jit
def _compute_mask(gamma_arr, u, dil):
    B, HW = u.shape
    return pl.pallas_call(
        _mask_kernel,
        out_shape=jax.ShapeDtypeStruct((B, HW), jnp.float32),
        grid=(1,),
        in_specs=[
            pl.BlockSpec(memory_space=pltpu.MemorySpace.SMEM),        # gamma
            pl.BlockSpec((B, HW), lambda i: (0, 0)),                  # uniforms
            pl.BlockSpec((HW, HW), lambda i: (0, 0)),                 # dilation
        ],
        out_specs=pl.BlockSpec((B, HW), lambda i: (0, 0)),
        compiler_params=pltpu.CompilerParams(
            dimension_semantics=("arbitrary",),
        ),
    )(gamma_arr, u, dil)


# --------------------------------------------------------------------------
# Kernel 2: the hot path -- tiled broadcast multiply (HBM-bandwidth bound).
# --------------------------------------------------------------------------
def _mul_kernel(mask_ref, x_ref, o_ref):
    """mask: (B, hw_tile) f32 (pre-scaled); x/o: (B, c_tile, hw_tile)."""
    m = mask_ref[...][:, None, :]                                     # (B, 1, hw)
    # Keep math in f32; cast only on the final store (v5e bf16 VALU-less path).
    o_ref[...] = (x_ref[...].astype(jnp.float32) * m).astype(o_ref.dtype)


def _choose_tiles(b, c, hw, itemsize, target_tile_bytes=2 << 20):
    """Pick (c_tile, hw_tile).

    Constraints: hw_tile multiple of 128 or == HW; c_tile multiple of the
    dtype sublane packing (8 f32 / 16 bf16 / 32 int8) or == C.
    Targets: ~2 MiB x-tiles and >= 2 total grid steps (v7x megacore).
    """
    sub = max(8, 32 // max(1, itemsize))      # dtype-aware sublane multiple

    # Channel tile.
    if c <= sub:
        c_tile = c
    else:
        c_tile = (c // sub) * sub
        budget_c = max(sub, (target_tile_bytes // max(1, b * hw * itemsize)) // sub * sub)
        c_tile = min(c_tile, budget_c)
        if c_tile >= c:                       # keep >= 2 channel tiles
            c_tile = max(sub, ((c // 2) // sub) * sub)
        while c_tile > sub and c % c_tile:    # prefer an exact divisor of C
            c_tile -= sub

    # Lane tile: split only when HW is a clean multiple of 128 and we either
    # still need >= 2 grid steps or the tile exceeds the byte budget.
    hw_tile = hw
    if hw % 128 == 0:
        def shrink(t):
            k = t // 128 - 1
            while k >= 1 and (hw // 128) % k:
                k -= 1
            return 128 * k if k >= 1 else t

        if c_tile == c and hw > 128:          # channel axis gives only 1 step
            hw_tile = shrink(hw_tile)
        while b * c_tile * hw_tile * itemsize > target_tile_bytes and hw_tile > 128:
            new_t = shrink(hw_tile)
            if new_t == hw_tile:
                break
            hw_tile = new_t
    return c_tile, hw_tile


@functools.partial(jax.jit, static_argnames=("c_tile", "hw_tile"))
def _dropblock_apply(mask, x3, c_tile, hw_tile):
    B, C, HW = x3.shape
    grid = (pl.cdiv(C, c_tile), pl.cdiv(HW, hw_tile))
    itemsize = x3.dtype.itemsize

    tile_bytes = B * c_tile * hw_tile * itemsize
    mask_bytes = B * hw_tile * 4
    # x tile + o tile double-buffered, mask double-buffered, plus headroom.
    needed = 4 * tile_bytes + 2 * mask_bytes + (2 << 20)
    cap = 32 << 20
    try:
        cap = max(16 << 20, min(cap, pltpu.get_tpu_info().vmem_capacity_bytes // 2))
    except Exception:  # hardware query unavailable -> conservative 32 MiB cap
        pass
    vmem_limit = int(min(max(needed, 8 << 20), cap))

    cost = pl.CostEstimate(
        flops=int(B * C * HW),
        transcendentals=0,
        bytes_accessed=int(2 * B * C * HW * itemsize + B * HW * 4 * grid[0]),
    )

    # NOTE: input_output_aliases={1: 0} would halve the HBM footprint inside a
    # training step, but forces a defensive copy when the caller keeps x alive,
    # so it is left off by default.
    return pl.pallas_call(
        _mul_kernel,
        out_shape=jax.ShapeDtypeStruct(x3.shape, x3.dtype),
        grid=grid,
        in_specs=[
            pl.BlockSpec((B, hw_tile), lambda c, h: (0, h)),           # mask
            pl.BlockSpec((B, c_tile, hw_tile), lambda c, h: (0, c, h)),  # x tile
        ],
        out_specs=pl.BlockSpec((B, c_tile, hw_tile), lambda c, h: (0, c, h)),
        compiler_params=pltpu.CompilerParams(
            dimension_semantics=("parallel", "parallel"),
            vmem_limit_bytes=vmem_limit,
        ),
        cost_estimate=cost,
    )(mask, x3)


# --------------------------------------------------------------------------
# Host-side helpers / modules.
# --------------------------------------------------------------------------
@functools.lru_cache(maxsize=None)
def _dilation_matrix(h, w, block_size):
    """D[(i*W+j),(k*W+l)] = 1 iff |i-k| <= pad and |j-l| <= pad (same-pad pool)."""
    pad = block_size // 2

    def band(n):
        idx = jnp.arange(n)
        return (jnp.abs(idx[:, None] - idx[None, :]) <= pad).astype(jnp.float32)

    # TODO(synk): for large H*W (e.g. 56x56) this dense (HW, HW) operand outgrows
    # VMEM; switch the mask kernel to separable per-axis banded matmuls (or a
    # pltpu.roll-based dilation) there.
    return jnp.kron(band(h), band(w))


class DropBlock2D:
    """Minimal DropBlock2D whose forward runs in the Pallas kernels above."""

    def __init__(self, drop_prob=0.0, block_size=3):
        assert block_size % 2 == 1, "odd block_size only"
        self.drop_prob = float(drop_prob)
        self.block_size = int(block_size)
        self.training = True

    def __call__(self, x, seed=0):
        if (not self.training) or float(self.drop_prob) == 0.0:
            return x
        B, C, H, W = x.shape
        HW = H * W
        gamma = float(self.drop_prob) / (self.block_size ** 2)

        # NOTE: reusing the default seed reproduces the same drop pattern every
        # call; thread a fresh seed per training step in real use.
        u = jax.random.uniform(jax.random.PRNGKey(seed), (B, HW), dtype=jnp.float32)
        dil = _dilation_matrix(H, W, self.block_size)
        gamma_arr = jnp.array([gamma], dtype=jnp.float32)

        # One-shot mask (already renormalized / scaled), f32.
        mask = _compute_mask(gamma_arr, u, dil)

        # Hot path: lane-dense (B, C, H*W) broadcast multiply, tiled over (C, HW).
        x3 = x.reshape(B, C, HW)
        c_tile, hw_tile = _choose_tiles(B, C, HW, x.dtype.itemsize)
        y3 = _dropblock_apply(mask, x3, c_tile, hw_tile)
        return y3.reshape(B, C, H, W)


class LinearScheduler:
    """JAX port of the PyTorch LinearScheduler wrapper (forward = delegate)."""

    def __init__(self, module, start_value, stop_value, nr_steps):
        self.module = module
        self.iter = 0
        self.drop_values = jnp.linspace(start_value, stop_value, nr_steps)

    def forward(self, x, **kwargs):
        return self.module(x, **kwargs)

    __call__ = forward

    def step(self):
        if self.iter < len(self.drop_values):
            self.module.drop_prob = float(self.drop_values[self.iter])
        self.iter += 1


if __name__ == "__main__":
    key = jax.random.PRNGKey(0)
    x = jax.random.normal(key, (2, 4, 16, 16), dtype=jnp.float32)

    inner = DropBlock2D(drop_prob=0.0, block_size=3)
    sched = LinearScheduler(inner, start_value=0.0, stop_value=0.25, nr_steps=5)

    # Ramp the drop probability a few steps, then run the forward pass.
    for _ in range(3):
        sched.step()

    y = sched(x, seed=0)
    jax.block_until_ready(y)
    assert y.shape == x.shape and y.dtype == x.dtype
    assert bool(jnp.all(jnp.isfinite(y)))

    # Pure-JAX reference with the same uniforms (correctness check).
    B, C, H, W = x.shape
    gamma = float(inner.drop_prob) / (inner.block_size ** 2)
    u = jax.random.uniform(jax.random.PRNGKey(0), (B, H * W), dtype=jnp.float32)
    dil = _dilation_matrix(H, W, inner.block_size)
    seed_m = (u < gamma).astype(jnp.float32)
    bm = jnp.where(seed_m @ dil > 0.0, 0.0, 1.0)
    keepn = bm.sum()
    scale = jnp.where(keepn > 0.0, bm.size / keepn, 0.0)
    ref = x * (bm * scale).reshape(B, 1, H, W)[:, :, :, :].repeat(1, axis=1).reshape(B, 1, H, W)
    ref = x * (bm * scale).reshape(B, H, W)[:, None, :, :]
    assert bool(jnp.allclose(y, ref, atol=1e-5, rtol=1e-5))

    print("KERNEL_OK")
</pallas_src>

<mosaic_0001>
module attributes {stable_mosaic.version = 11 : i64} {
  func.func @_mask_kernel(%arg0: i32, %arg1: memref<1xf32, #tpu.memory_space<smem>>, %arg2: memref<2x256xf32, #tpu.memory_space<vmem>>, %arg3: memref<256x256xf32, #tpu.memory_space<vmem>>, %arg4: memref<2x256xf32, #tpu.memory_space<vmem>>) attributes {dimension_semantics = [#tpu.dimension_semantics<arbitrary>], iteration_bounds = array<i64: 1>, scalar_prefetch = 0 : i64, scratch_operands = 0 : i64, tpu.core_type = #tpu.core_type<tc>, window_params = [{transform_indices = @transform_0, window_bounds = array<i64: 1>}, {pipeline_mode = #tpu.pipeline_mode<synchronous>, transform_indices = @transform_1, window_bounds = array<i64: 2, 256>}, {pipeline_mode = #tpu.pipeline_mode<synchronous>, transform_indices = @transform_2, window_bounds = array<i64: 256, 256>}, {pipeline_mode = #tpu.pipeline_mode<synchronous>, transform_indices = @transform_3, window_bounds = array<i64: 2, 256>}]} {
    %c0 = arith.constant 0 : index
    %0 = memref.load %arg1[%c0] : memref<1xf32, #tpu.memory_space<smem>>
    %c0_0 = arith.constant 0 : index
    %c0_1 = arith.constant 0 : index
    %1 = vector.load %arg2[%c0_0, %c0_1] : memref<2x256xf32, #tpu.memory_space<vmem>>, vector<2x256xf32>
    %2 = vector.broadcast %0 : f32 to vector<2x256xf32>
    %3 = arith.cmpf olt, %1, %2 : vector<2x256xf32>
    %4 = arith.extui %3 : vector<2x256xi1> to vector<2x256xi32>
    %5 = arith.sitofp %4 : vector<2x256xi32> to vector<2x256xf32>
    %c0_2 = arith.constant 0 : index
    %c0_3 = arith.constant 0 : index
    %6 = vector.load %arg3[%c0_2, %c0_3] : memref<256x256xf32, #tpu.memory_space<vmem>>, vector<256x256xf32>
    %cst = arith.constant dense<0.000000e+00> : vector<2x256xf32>
    %7 = tpu.matmul %5, %6, %cst {dimension_numbers = #tpu.dot_dimension_numbers<[1], [0], [0], [1], [0, 0, 1, 1], [], []>} : vector<2x256xf32>, vector<256x256xf32>, vector<2x256xf32> -> vector<2x256xf32>
    %cst_4 = arith.constant 0.000000e+00 : f32
    %8 = vector.broadcast %cst_4 : f32 to vector<2x256xf32>
    %9 = arith.cmpf ogt, %7, %8 : vector<2x256xf32>
    %cst_5 = arith.constant 0.000000e+00 : f32
    %cst_6 = arith.constant 1.000000e+00 : f32
    %10 = vector.broadcast %cst_5 : f32 to vector<2x256xf32>
    %11 = vector.broadcast %cst_6 : f32 to vector<2x256xf32>
    %12 = arith.select %9, %10, %11 : vector<2x256xi1>, vector<2x256xf32>
    %13 = vector.shape_cast %12 : vector<2x256xf32> to vector<1x2x256xf32>
    %cst_7 = arith.constant dense<0.000000e+00> : vector<1xf32>
    %14 = vector.multi_reduction <add>, %13, %cst_7 [1, 2] : vector<1x2x256xf32> to vector<1xf32>
    %15 = vector.shape_cast %14 : vector<1xf32> to vector<1x1x1xf32>
    %16 = vector.extract %15[0, 0, 0] : f32 from vector<1x1x1xf32>
    %cst_8 = arith.constant 0.000000e+00 : f32
    %17 = arith.cmpf ogt, %16, %cst_8 : f32
    %cst_9 = arith.constant 5.120000e+02 : f32
    %18 = arith.divf %cst_9, %16 : f32
    %cst_10 = arith.constant 0.000000e+00 : f32
    %19 = arith.select %17, %18, %cst_10 : f32
    %20 = vector.broadcast %19 : f32 to vector<2x256xf32>
    %21 = arith.mulf %12, %20 : vector<2x256xf32>
    %c0_11 = arith.constant 0 : index
    %c0_12 = arith.constant 0 : index
    %22 = vector.load %arg4[%c0_11, %c0_12] : memref<2x256xf32, #tpu.memory_space<vmem>>, vector<2x256xf32>
    tpu.vector_store %arg4[%c0_11, %c0_12], %21 {strides = array<i32>} : memref<2x256xf32, #tpu.memory_space<vmem>>, vector<2x256xf32>,
    return
  }
  func.func @transform_0(%arg0: i32) -> i32 {
    %c0_i32 = arith.constant 0 : i32
    %c0_i32_0 = arith.constant 0 : i32
    return %c0_i32 : i32
  }
  func.func @transform_1(%arg0: i32) -> (i32, i32) {
    %c0_i32 = arith.constant 0 : i32
    %c0_i32_0 = arith.constant 0 : i32
    %c0_i32_1 = arith.constant 0 : i32
    return %c0_i32, %c0_i32_0 : i32, i32
  }
  func.func @transform_2(%arg0: i32) -> (i32, i32) {
    %c0_i32 = arith.constant 0 : i32
    %c0_i32_0 = arith.constant 0 : i32
    %c0_i32_1 = arith.constant 0 : i32
    return %c0_i32, %c0_i32_0 : i32, i32
  }
  func.func @transform_3(%arg0: i32) -> (i32, i32) {
    %c0_i32 = arith.constant 0 : i32
    %c0_i32_0 = arith.constant 0 : i32
    %c0_i32_1 = arith.constant 0 : i32
    return %c0_i32, %c0_i32_0 : i32, i32
  }
}

</mosaic_0001>

<bundles_post_ra>
// kernel: _compute_mask.1
= control target key start
LH: loop header
LB: loop body
LE: loop exit
PB: predicated region body
PF: predicated region fallthrough
CT: control target
= control target key end

     0   :  { %9 = vsyncpa [#allocation4], 0  ;;  %s399_s0 = inlined_call_operand.<no memory space> [shape: f32[1], index: 0, kind: input, shape index: {}]   ;;  %s400_s1 = inlined_call_operand.hbm [shape: f32[2,256], index: 1, kind: input, shape index: {}]   ;;  %s401_s2 = inlined_call_operand.hbm [shape: f32[256,256], index: 2, kind: input, shape index: {}]   ;;  %s402_s3 = inlined_call_operand.hbm [shape: f32[2,256], index: 3, kind: output, shape index: {}]  }
   0x1   :  { %10 = vsyncpa [#allocation7], 0 }
   0x2   :  { %11 = vsyncpa [#allocation5], 0  ;;  %s19_s14 = sshll.u32 %s400_s1, 4  ;;  %s357_s15 = smov [#allocation3]   ;;  %s20_s14 = int_to_ptr.hbm [resolvable:$true] %s19_s14 }
   0x3   :  { %s21_s16 = sshll.u32 %s357_s15, 4  ;;  %s29_s19 = sshll.u32 %s401_s2, 4  ;;  %s22_s16 = int_to_ptr.vmem [resolvable:$true] %s21_s16  ;;  %s30_s19 = int_to_ptr.hbm [resolvable:$true] %s29_s19 }
   0x4   :  { %24 = dma.hbm_to_vmem [thread:$0]  %s20_s14, 64, %s22_s16, [#allocation4]  }
   0x5   :  { %s358_s20 = smov [#allocation6]   ;;  %s359_s22 = smov 256  }
   0x6   :  { %s31_s21 = sshll.u32 %s358_s20, 4  ;;  %s360_s23 = smov 16   ;;  %s32_s21 = int_to_ptr.vmem [resolvable:$true] %s31_s21 }
   0x7   :  { %37 = dma.hbm_to_vmem [thread:$0]  %s30_s19, 8192, %s32_s21, [#allocation7], %s359_s22, %s359_s22, %s360_s23  }
   0x8   :  { %351 = dma.done.wait [#allocation4], 64  }
   0x9   :  { %352 = vsyncadd [#allocation4], 4294967232 }
   0xa   :  { %353 = dma.done.wait [#allocation7], 8192  }
   0xb   :  { %354 = vsyncadd [#allocation7], 4294959104  ;;  %v83_v0 = vld [vmem:[#allocation6 + $0xf8] sm:$0xff]  ;;  %v81_v2 = vld [vmem:[#allocation6 + $0xe8] sm:$0xff]  ;;  %v48_v38 = vstv %s399_s0  ;;  %v361_v48 = vmov 0.0   ;;  %vm206_vm1 = vcmask 1041408  }
   0xc   :  { %v115_v1 = vld [vmem:[#allocation6 + $0x1f8] sm:$0xff]  ;;  %162 = vmatpush.msra.mxu2 %v83_v0  ;;  %v113_v3 = vld [vmem:[#allocation6 + $0x1e8] sm:$0xff]  ;;  %v82_v6 = vld [vmem:[#allocation6 + $0xf0] sm:$0xff]  ;;  %s363_s26 = smov [#allocation8]   ;;  %s254_s30 = sshll.u32 %s402_s3, 4  ;;  %s255_s30 = int_to_ptr.hbm [resolvable:$true] %s254_s30 }
   0xd   :  { %182 = vmatpush.msra.mxu3 %v115_v1  ;;  %v79_v4 = vld [vmem:[#allocation6 + $0xd8] sm:$0xff]  ;;  %v114_v7 = vld [vmem:[#allocation6 + $0x1f0] sm:$0xff]  ;;  %v80_v8 = vld [vmem:[#allocation6 + $0xe0] sm:$0xff]  ;;  %122 = vmatpush.msra.mxu0 %v82_v6  ;;  %s252_s27 = sshll.u32 %s363_s26, 4  ;;  %s253_s27 = int_to_ptr.vmem [resolvable:$true] %s252_s27 }
   0xe   :  { %v111_v5 = vld [vmem:[#allocation6 + $0x1d8] sm:$0xff]  ;;  %163 = vmatpush.msra.mxu2 %v81_v2  ;;  %v112_v9 = vld [vmem:[#allocation6 + $0x1e0] sm:$0xff]  ;;  %142 = vmatpush.msra.mxu1 %v114_v7  ;;  %v77_v10 = vld [vmem:[#allocation6 + $0xc8] sm:$0xff] }
   0xf   :  { %183 = vmatpush.msra.mxu3 %v113_v3  ;;  %v109_v11 = vld [vmem:[#allocation6 + $0x1c8] sm:$0xff]  ;;  %v78_v12 = vld [vmem:[#allocation6 + $0xd0] sm:$0xff]  ;;  %123 = vmatpush.msra.mxu0 %v80_v8  ;;  %v75_v14 = vld [vmem:[#allocation6 + $0xb8] sm:$0xff] }
  0x10   :  { %164 = vmatpush.msra.mxu2 %v79_v4  ;;  %v110_v13 = vld [vmem:[#allocation6 + $0x1d0] sm:$0xff]  ;;  %143 = vmatpush.msra.mxu1 %v112_v9  ;;  %v107_v15 = vld [vmem:[#allocation6 + $0x1b8] sm:$0xff]  ;;  %v76_v16 = vld [vmem:[#allocation6 + $0xc0] sm:$0xff] }
  0x11   :  { %184 = vmatpush.msra.mxu3 %v111_v5  ;;  %v108_v17 = vld [vmem:[#allocation6 + $0x1c0] sm:$0xff]  ;;  %124 = vmatpush.msra.mxu0 %v78_v12  ;;  %v73_v18 = vld [vmem:[#allocation6 + $0xa8] sm:$0xff]  ;;  %v74_v20 = vld [vmem:[#allocation6 + $0xb0] sm:$0xff]  ;;  %v362_v12 = vmov 1.0  }
  0x12   :  { %165 = vmatpush.msra.mxu2 %v77_v10  ;;  %144 = vmatpush.msra.mxu1 %v110_v13  ;;  %v105_v19 = vld [vmem:[#allocation6 + $0x1a8] sm:$0xff]  ;;  %v106_v21 = vld [vmem:[#allocation6 + $0x1b0] sm:$0xff]  ;;  %v71_v22 = vld [vmem:[#allocation6 + $0x98] sm:$0xff] }
  0x13   :  { %185 = vmatpush.msra.mxu3 %v109_v11  ;;  %125 = vmatpush.msra.mxu0 %v76_v16  ;;  %v103_v23 = vld [vmem:[#allocation6 + $0x198] sm:$0xff]  ;;  %v72_v24 = vld [vmem:[#allocation6 + $0xa0] sm:$0xff]  ;;  %v69_v26 = vld [vmem:[#allocation6 + $0x88] sm:$0xff] }
  0x14   :  { %166 = vmatpush.msra.mxu2 %v75_v14  ;;  %145 = vmatpush.msra.mxu1 %v108_v17  ;;  %v104_v25 = vld [vmem:[#allocation6 + $0x1a0] sm:$0xff]  ;;  %v101_v27 = vld [vmem:[#allocation6 + $0x188] sm:$0xff]  ;;  %v70_v28 = vld [vmem:[#allocation6 + $0x90] sm:$0xff] }
  0x15   :  { %186 = vmatpush.msra.mxu3 %v107_v15  ;;  %126 = vmatpush.msra.mxu0 %v74_v20  ;;  %v102_v29 = vld [vmem:[#allocation6 + $0x190] sm:$0xff]  ;;  %v67_v30 = vld [vmem:[#allocation6 + $0x78] sm:$0xff]  ;;  %v68_v32 = vld [vmem:[#allocation6 + $0x80] sm:$0xff] }
  0x16   :  { %167 = vmatpush.msra.mxu2 %v73_v18  ;;  %146 = vmatpush.msra.mxu1 %v106_v21  ;;  %v99_v31 = vld [vmem:[#allocation6 + $0x178] sm:$0xff]  ;;  %v100_v33 = vld [vmem:[#allocation6 + $0x180] sm:$0xff]  ;;  %v65_v34 = vld [vmem:[#allocation6 + $0x68] sm:$0xff] }
  0x17   :  { %187 = vmatpush.msra.mxu3 %v105_v19  ;;  %127 = vmatpush.msra.mxu0 %v72_v24  ;;  %v97_v35 = vld [vmem:[#allocation6 + $0x168] sm:$0xff]  ;;  %v66_v36 = vld [vmem:[#allocation6 + $0x70] sm:$0xff]  ;;  %v63_v39 = vld [vmem:[#allocation6 + $0x58] sm:$0xff] }
  0x18   :  { %168 = vmatpush.msra.mxu2 %v71_v22  ;;  %147 = vmatpush.msra.mxu1 %v104_v25  ;;  %v98_v37 = vld [vmem:[#allocation6 + $0x170] sm:$0xff]  ;;  %v95_v40 = vld [vmem:[#allocation6 + $0x158] sm:$0xff]  ;;  %v64_v41 = vld [vmem:[#allocation6 + $0x60] sm:$0xff] }
  0x19   :  { %188 = vmatpush.msra.mxu3 %v103_v23  ;;  %128 = vmatpush.msra.mxu0 %v70_v28  ;;  %v96_v42 = vld [vmem:[#allocation6 + $0x160] sm:$0xff]  ;;  %v47_v43 = vld [vmem:[#allocation3] sm:$0xf]  ;;  %v61_v44 = vld [vmem:[#allocation6 + $0x48] sm:$0xff] }
  0x1a   :  { %169 = vmatpush.msra.mxu2 %v69_v26  ;;  %148 = vmatpush.msra.mxu1 %v102_v29  ;;  %v93_v45 = vld [vmem:[#allocation6 + $0x148] sm:$0xff]  ;;  %vm49_vm0 = vcmp.lt.f32.partialorder %v47_v43, %v48_v38  ;;  %v62_v46 = vld [vmem:[#allocation6 + $0x50] sm:$0xff]  ;;  %v59_v50 = vld [vmem:[#allocation6 + $0x38] sm:$0xff] }
  0x1b   :  { %189 = vmatpush.msra.mxu3 %v101_v27  ;;  %129 = vmatpush.msra.mxu0 %v68_v32  ;;  %v94_v47 = vld [vmem:[#allocation6 + $0x150] sm:$0xff]  ;;  %v265_v49 = vsel %vm49_vm0, 1.0, %v361_v48  ;;  %v91_v51 = vld [vmem:[#allocation6 + $0x138] sm:$0xff]  ;;  %v60_v52 = vld [vmem:[#allocation6 + $0x40] sm:$0xff] }
  0x1c   :  { %170 = vmatpush.msra.mxu2 %v67_v30  ;;  %149 = vmatpush.msra.mxu1 %v100_v33  ;;  %117 = vst [vmem:[#allocation1] ss:$4 sm:$0xff] %v265_v49  ;;  %v92_v53 = vld [vmem:[#allocation6 + $0x140] sm:$0xff]  ;;  %v57_v54 = vld [vmem:[#allocation6 + $0x28] sm:$0xff]  ;;  %v58_v56 = vld [vmem:[#allocation6 + $0x30] sm:$0xff] }
  0x1d   :  { %190 = vmatpush.msra.mxu3 %v99_v31  ;;  %130 = vmatpush.msra.mxu0 %v66_v36  ;;  %v89_v55 = vld [vmem:[#allocation6 + $0x128] sm:$0xff]  ;;  %v90_v57 = vld [vmem:[#allocation6 + $0x130] sm:$0xff]  ;;  %v55_v58 = vld [vmem:[#allocation6 + $0x18] sm:$0xff] }
  0x1e   :  { %171 = vmatpush.msra.mxu2 %v65_v34  ;;  %150 = vmatpush.msra.mxu1 %v98_v37  ;;  %v87_v59 = vld [vmem:[#allocation6 + $0x118] sm:$0xff]  ;;  %v56_v60 = vld [vmem:[#allocation6 + $0x20] sm:$0xff]  ;;  %v53_v62 = vld [vmem:[#allocation6 + $0x8] sm:$0xff] }
  0x1f   :  { %191 = vmatpush.msra.mxu3 %v97_v35  ;;  %131 = vmatpush.msra.mxu0 %v64_v41  ;;  %v88_v61 = vld [vmem:[#allocation6 + $0x120] sm:$0xff]  ;;  %v85_v63 = vld [vmem:[#allocation6 + $0x108] sm:$0xff]  ;;  %v54_v2 = vld [vmem:[#allocation6 + $0x10] sm:$0xff] }
  0x20   :  { %172 = vmatpush.msra.mxu2 %v63_v39  ;;  %151 = vmatpush.msra.mxu1 %v96_v42  ;;  %v86_v3 = vld [vmem:[#allocation6 + $0x110] sm:$0xff]  ;;  %v52_v4 = vld [vmem:[#allocation6] sm:$0xff] }
  0x21   :  { %192 = vmatpush.msra.mxu3 %v95_v40  ;;  %132 = vmatpush.msra.mxu0 %v62_v46  ;;  %v84_v5 = vld [vmem:[#allocation6 + $0x100] sm:$0xff] }
  0x22   :  { %173 = vmatpush.msra.mxu2 %v61_v44  ;;  %152 = vmatpush.msra.mxu1 %v94_v47 }
  0x23   :  { %193 = vmatpush.msra.mxu3 %v93_v45  ;;  %133 = vmatpush.msra.mxu0 %v60_v52  ;;  %v118_v0 = vld.sshfl [vmem:[#allocation1] sm:$0xff pattern:$0x73625140]  ;;  %v119_v1 = vld.sshfl [vmem:[#allocation1 + $0x8] sm:$0xff pattern:$0x73625140] }
  0x24   :  { %174 = vmatpush.msra.mxu2 %v59_v50  ;;  %153 = vmatpush.msra.mxu1 %v92_v53 }
  0x25   :  { %194 = vmatpush.msra.mxu3 %v91_v51  ;;  %134 = vmatpush.msra.mxu0 %v58_v56 }
  0x26   :  { %175 = vmatpush.msra.mxu2 %v57_v54  ;;  %154 = vmatpush.msra.mxu1 %v90_v57 }
  0x27   :  { %195 = vmatpush.msra.mxu3 %v89_v55  ;;  %135 = vmatpush.msra.mxu0 %v56_v60 }
  0x28   :  { %176 = vmatpush.msra.mxu2 %v55_v58  ;;  %155 = vmatpush.msra.mxu1 %v88_v61 }
  0x29   :  { %196 = vmatpush.msra.mxu3 %v87_v59  ;;  %136 = vmatpush.msra.mxu0 %v54_v2 }
  0x2a   :  { %177 = vmatpush.msra.mxu2 %v53_v62  ;;  %156 = vmatpush.msra.mxu1 %v86_v3 }
  0x2b   :  { %197 = vmatpush.msra.mxu3 %v85_v63  ;;  %178 = vmatmul.f32.vlgmr.msra.gmra.mxu2 %v118_v0 }
  0x2c   :  { %198 = vmatmul.f32.vlgmr.msra.gmra.mxu3 %v119_v1  ;;  %137 = vmatpush.msra.mxu0 %v52_v4 }
  0x2d   :  { %157 = vmatpush.msra.mxu1 %v84_v5  ;;  %138 = vmatmul.f32.vlgmr.msra.gmra.mxu0 %v118_v0 }
  0x2e   :  { %158 = vmatmul.f32.vlgmr.msra.gmra.mxu1 %v119_v1 }
  0xaa   :  { %v139_v6 = vpop.f32.mrf.mxu0 }
  0xab   :  { %v159_v7 = vpop.f32.mrf.mxu1 }
  0xac   :  { %v160_v8 = vadd.f32 %v159_v7, %v139_v6 }
  0xae   :  { %v179_v9 = vpop.f32.mrf.mxu2  ;;  %vm202_vm2 = vcmp.gt.f32.partialorder %v160_v8, 0.0 }
  0xaf   :  { %v199_v10 = vpop.f32.mrf.mxu3  ;;  %v204_v13 = vsel %vm202_vm2, 0.0, %v362_v12 }
  0xb0   :  { %v200_v11 = vadd.f32 %v199_v10, %v179_v9  ;;  %v207_v14 = vsel %vm206_vm1, %v204_v13, 0.0 }
  0xb2   :  { %vm203_vm3 = vcmp.gt.f32.partialorder %v200_v11, 0.0 }
  0xb3   :  { %v205_v15 = vsel %vm203_vm3, 0.0, %v362_v12 }
  0xb4   :  { %v208_v16 = vsel %vm206_vm1, %v205_v15, 0.0 }
  0xb5   :  { %v209_v17 = vadd.f32 %v208_v16, %v207_v14 }
  0xb7   :  { %210 = vadd.xlane.f32.xlu0 %v209_v17 }
 0x12a   :  { %v211_v18 = vpop.xlane.xlu0 %210 }
 0x12b   :  { %v212_v19 = vrot.slane %v211_v18, 4 }
 0x12d   :  { %v213_v20 = vadd.f32 %v212_v19, %v211_v18 }
 0x12f   :  { %v214_v21 = vrot.slane %v213_v20, 2 }
 0x131   :  { %v215_v22 = vadd.f32 %v214_v21, %v213_v20 }
 0x133   :  { %v216_v23 = vrot.slane %v215_v22, 1 }
 0x135   :  { %v217_v24 = vadd.f32 %v216_v23, %v215_v22 }
 0x137   :  { %266 = vpush %v217_v24 }
 0x168   :  { %s267_s0 = spop %266 }
 0x169   :  { %v220_v25 = vstv %s267_s0  ;;  %p219_p0 = scmp.gt.f32.partialorder %s267_s0, 0.0 }
 0x16a   :  { %277 = vrcp.f32 %v220_v25  ;;  %v232_v29 = vand.u32 2147483648, %v220_v25  ;;  %v230_v31 = vand.u32 2147483647, %v220_v25  ;;  %vm226_vm5 = vweird.f32 %v220_v25 }
 0x16c   :  { %v233_v33 = vor.u32 1.1754944e-38, %v232_v29  ;;  %vm231_vm7 = vcmp.eq.f32.partialorder %v230_v31, 8.507059e+37 }
 0x170   :  { %v278_v26 = vpop.eup %277 }
 0x171   :  { %v222_v27 = vmul.f32 %v278_v26, %v220_v25  ;;  %vm227_vm4 = vweird.f32 %v278_v26 }
 0x172   :  { %vm228_vm6 = vmor %vm226_vm5, %vm227_vm4 }
 0x173   :  { %v223_v28 = vsub.f32 1.0, %v222_v27 }
 0x175   :  { %v224_v30 = vmul.f32 %v278_v26, %v223_v28 }
 0x177   :  { %v225_v32 = vadd.f32 %v278_v26, %v224_v30 }
 0x179   :  { %v229_v34 = vsel %vm228_vm6, %v278_v26, %v225_v32 }
 0x17a   :  { %v234_v35 = vsel %vm231_vm7, %v233_v33, %v229_v34 }
 0x17b   :  { %268 = vpush %v234_v35 }
 0x1ac   :  { %s269_s24 = spop %268 }
 0x1ad   :  { %s236_s25 = smul.f32 512.0, %s269_s24 }
 0x1af   :  { %s404_s25 = smov (!%p219_p0, %s236_s25), 0.0 }
 0x1b0   :  { %v238_v36 = vstv %s404_s25 }
 0x1b1   :  { %v240_v37 = vmul.f32 %v238_v36, %v205_v15  ;;  %v239_v38 = vmul.f32 %v238_v36, %v204_v13 }
 0x1b3   :  { %v243_v39 = vrot.slane %v240_v37, 6 }
 0x1b5   :  { %v244_v40 = vsel %vm206_vm1, %v239_v38, %v243_v39 }
 0x1b6   :  { %246 = vst [vmem:[#allocation8] sm:$0xf] %v244_v40 }
 0x1b7   :  { %257 = dma.vmem_to_hbm [thread:$0]  %s253_s27, 64, %s255_s30, [#allocation5]  }
 0x1b8   :  { %355 = dma.done.wait [#allocation5], 64  }
 0x1b9   :  { %356 = vsyncadd [#allocation5], 4294967232 }
 0x1ba   :  { %262 = vsyncpa [#allocation4], 1 }
 0x1bb   :  { %263 = vsyncpa [#allocation7], 1 }
 0x1bc   :  { %264 = vsyncpa [#allocation5], 1 }

</bundles_post_ra>
